<compile_context>
chip_gen: v5e
topology: v5e:2x2
jax: 0.10.0
libtpu: 0.0.40
codegen_flags: <defaults>
</compile_context>

<pallas_src>
import functools

import jax
import jax.numpy as jnp
from jax import lax
from jax.experimental import pallas as pl
from jax.experimental.pallas import tpu as pltpu


def _round_up(x: int, m: int) -> int:
    return ((x + m - 1) // m) * m


def _obs_only_kernel(state_ref, ht_ref, obs_ref):
    # obs[n] = H @ state[n] == state @ H^T (H passed pre-transposed).
    obs_ref[...] = lax.dot_general(
        state_ref[...], ht_ref[...],
        dimension_numbers=(((1,), (0,)), ((), ())),
        preferred_element_type=jnp.float32).astype(obs_ref.dtype)


def _ekf_measurement_kernel(state_ref, ht_ref, h_flat_ref, r_flat_ref,
                            obs_ref, jac_hbm, rexp_hbm,
                            jac_scr, rexp_scr, sem,
                            *, tile_n, nblocks, spc, rem):
    # state_ref : [tile_n, dim_state]          (VMEM, pipelined input)
    # ht_ref    : [dim_state, dim_obs]         (VMEM, constant -> DMA'd once)
    # h_flat_ref: [1, dim_obs*dim_state]       (VMEM, constant)
    # r_flat_ref: [1, dim_obs*dim_obs]         (VMEM, constant)
    # obs_ref   : [tile_n, dim_obs]            (VMEM, pipelined output)
    # jac_hbm   : [N, dim_obs*dim_state]       (HBM, manual DMA writeback)
    # rexp_hbm  : [N, dim_obs*dim_obs]         (HBM, manual DMA writeback)
    # jac_scr   : [tile_n, dim_obs*dim_state]  (VMEM scratch, single-buffered)
    # rexp_scr  : [tile_n, dim_obs*dim_obs]    (VMEM scratch, single-buffered)
    j = pl.program_id(1)
    gstep = pl.program_id(0) * spc + j   # global batch-block index (may overshoot)

    # Fill the constant slabs once per TensorCore: inner step 0 is the first
    # step every core executes for its outer slice, so this is correct under
    # the "parallel" outer axis. Afterwards the slabs are only read by DMA --
    # no per-step VPU broadcast / vst traffic.
    @pl.when(j == 0)
    def _():
        jac_scr[...] = jnp.broadcast_to(
            h_flat_ref[...], jac_scr.shape).astype(jac_scr.dtype)
        rexp_scr[...] = jnp.broadcast_to(
            r_flat_ref[...], rexp_scr.shape).astype(rexp_scr.dtype)

    # obs[n] = H @ state[n] == state @ H^T, standard contraction dims since H
    # is passed pre-transposed (no in-kernel relayout / vxpose).
    obs = lax.dot_general(
        state_ref[...], ht_ref[...],
        dimension_numbers=(((1,), (0,)), ((), ())),
        preferred_element_type=jnp.float32)
    obs_ref[...] = obs.astype(obs_ref.dtype)

    # Manual writeback of the constant slabs for this batch block.
    def _copy_rows(rows):
        row0 = pl.multiple_of(gstep * tile_n, tile_n)
        jc = pltpu.make_async_copy(jac_scr.at[pl.ds(0, rows), :],
                                   jac_hbm.at[pl.ds(row0, rows), :],
                                   sem.at[0])
        rc = pltpu.make_async_copy(rexp_scr.at[pl.ds(0, rows), :],
                                   rexp_hbm.at[pl.ds(row0, rows), :],
                                   sem.at[1])
        jc.start()
        rc.start()
        jc.wait()
        rc.wait()

    if rem == tile_n:
        # N divides evenly into tile_n-row blocks: single copy shape.
        @pl.when(gstep < nblocks)
        def _():
            _copy_rows(tile_n)
    else:
        # Ragged last block: static `rem` known at trace time.
        @pl.when(gstep < nblocks - 1)
        def _():
            _copy_rows(tile_n)

        @pl.when(gstep == nblocks - 1)
        def _():
            _copy_rows(rem)


def ekf_measurement_forward(state, H, R, *, tile_n=None, vmem_budget_bytes=None,
                            materialize_constant_outputs=True):
    """EKF measurement forward for the canonical linear model h(x) = H @ x.

    state: [N, dim_state, 1], H: [dim_obs, dim_state], R: [dim_obs, dim_obs].
    Returns (obs_prior [N, dim_obs, 1], jac [N, dim_obs, dim_state],
             R_expanded [N, dim_obs, dim_obs]).
    """
    N, dim_state, one = state.shape
    assert one == 1
    dim_obs, ds2 = H.shape
    assert ds2 == dim_state
    assert R.shape == (dim_obs, dim_obs)

    obs_dtype = state.dtype
    itemsize = jnp.dtype(obs_dtype).itemsize
    h_itemsize = jnp.dtype(H.dtype).itemsize
    r_itemsize = jnp.dtype(R.dtype).itemsize
    w_jac = dim_obs * dim_state
    w_r = dim_obs * dim_obs

    state2d = state[..., 0]                 # [N, dim_state]  (glue)
    ht = jnp.transpose(H)                   # [dim_state, dim_obs]

    if not materialize_constant_outputs:
        # Review item #2: consumers that immediately contract jac / R can take
        # the broadcasts and let XLA fuse; only obs goes through Pallas.
        if N <= 8:
            tn = N
        else:
            tn = min(2048, min(N, _round_up(pl.cdiv(N, 2), 8)))
            tn = max(8, (tn // 8) * 8)
        obs2d = pl.pallas_call(
            _obs_only_kernel,
            out_shape=jax.ShapeDtypeStruct((N, dim_obs), obs_dtype),
            grid=(pl.cdiv(N, tn),),
            in_specs=[pl.BlockSpec((tn, dim_state), lambda i: (i, 0)),
                      pl.BlockSpec((dim_state, dim_obs), lambda i: (0, 0))],
            out_specs=pl.BlockSpec((tn, dim_obs), lambda i: (i, 0)),
            compiler_params=pltpu.CompilerParams(
                dimension_semantics=("parallel",)),
        )(state2d, ht)
        jac = jnp.broadcast_to(H[None], (N, dim_obs, dim_state))
        r_exp = jnp.broadcast_to(R[None], (N, dim_obs, dim_obs))
        return obs2d[..., None], jac, r_exp

    h_flat = H.reshape(1, w_jac)            # lane-dense broadcast source
    r_flat = R.reshape(1, w_r)

    # ---- tile_n derived from the per-core VMEM budget -----------------------
    if vmem_budget_bytes is None:
        try:
            phys = int(pltpu.get_tpu_info().vmem_capacity_bytes)
        except Exception:
            phys = 64 << 20                 # v7x per-TC physical VMEM (smallest)
        vmem_budget_bytes = min(phys // 2, 32 << 20)
    # Per batch row: double-buffered state + obs blocks, single-buffered
    # jac / R scratch slabs (constant content -> no double buffer).
    per_row = (2 * dim_state * itemsize + 2 * dim_obs * itemsize
               + w_jac * h_itemsize + w_r * r_itemsize)

    if N <= 8:
        tile_n = N                          # single full block
    else:
        if tile_n is None:
            tile_n = vmem_budget_bytes // per_row
        tile_n = int(max(8, min(tile_n, 4096)))
        # Keep >= 2 batch blocks so both v7x TensorCores get work.
        tile_n = min(tile_n, _round_up(pl.cdiv(N, 2), 8))
        tile_n = max(8, (tile_n // 8) * 8)  # (8,128) sublane rule

    nblocks = pl.cdiv(N, tile_n)
    nc = 2 if nblocks >= 2 else 1           # outer "parallel" axis (v7x TCs)
    spc = pl.cdiv(nblocks, nc)              # inner steps per core
    rem = N - (nblocks - 1) * tile_n        # rows in the last (ragged) block
    last_blk = nblocks - 1

    def batch_idx(i, j):
        # Overshoot steps of the last core are clamped to the last valid block
        # (identical recompute of obs; the manual DMAs are pl.when-gated off).
        return (jnp.minimum(i * spc + j, last_blk), 0)

    in_specs = [
        pl.BlockSpec((tile_n, dim_state), batch_idx),
        # Constants: fixed block index -> DMA'd once, not per step.
        pl.BlockSpec((dim_state, dim_obs), lambda i, j: (0, 0)),
        pl.BlockSpec((1, w_jac), lambda i, j: (0, 0)),
        pl.BlockSpec((1, w_r), lambda i, j: (0, 0)),
    ]
    out_specs = (
        pl.BlockSpec((tile_n, dim_obs), batch_idx),
        pl.BlockSpec(memory_space=pl.ANY),   # jac: manual DMA writeback
        pl.BlockSpec(memory_space=pl.ANY),   # R_expanded: manual DMA writeback
    )
    out_shapes = (
        jax.ShapeDtypeStruct((N, dim_obs), obs_dtype),
        jax.ShapeDtypeStruct((N, w_jac), H.dtype),
        jax.ShapeDtypeStruct((N, w_r), R.dtype),
    )
    scratch_shapes = [
        pltpu.VMEM((tile_n, w_jac), H.dtype),
        pltpu.VMEM((tile_n, w_r), R.dtype),
        pltpu.SemaphoreType.DMA((2,)),
    ]

    vmem_need = (2 * tile_n * (dim_state + dim_obs) * itemsize
                 + tile_n * w_jac * h_itemsize + tile_n * w_r * r_itemsize)
    vmem_limit = int(min(max(16 << 20, vmem_need + (8 << 20)), 128 << 20))

    bytes_accessed = (N * dim_state * itemsize
                      + 2 * H.size * h_itemsize + R.size * r_itemsize
                      + N * dim_obs * itemsize
                      + N * w_jac * h_itemsize
                      + N * w_r * r_itemsize)
    cost = pl.CostEstimate(flops=2 * N * dim_obs * dim_state,
                           transcendentals=0,
                           bytes_accessed=bytes_accessed)

    kernel = functools.partial(_ekf_measurement_kernel, tile_n=tile_n,
                               nblocks=nblocks, spc=spc, rem=rem)

    obs2d, jac_flat, rexp_flat = pl.pallas_call(
        kernel,
        out_shape=out_shapes,
        grid=(nc, spc),
        in_specs=in_specs,
        out_specs=out_specs,
        scratch_shapes=scratch_shapes,
        compiler_params=pltpu.CompilerParams(
            dimension_semantics=("parallel", "arbitrary"),
            vmem_limit_bytes=vmem_limit,
            has_side_effects=True),
        cost_estimate=cost,
    )(state2d, ht, h_flat, r_flat)

    obs_prior = obs2d[..., None]                      # [N, dim_obs, 1]
    jac = jac_flat.reshape(N, dim_obs, dim_state)     # glue reshape
    r_exp = rexp_flat.reshape(N, dim_obs, dim_obs)    # glue reshape
    return obs_prior, jac, r_exp


if __name__ == "__main__":
    key = jax.random.PRNGKey(0)
    k_state, k_h, k_r = jax.random.split(key, 3)

    N = 64
    dim_state = 32
    dim_obs = 16

    state = jax.random.normal(k_state, (N, dim_state, 1), dtype=jnp.float32)
    H = jax.random.normal(k_h, (dim_obs, dim_state), dtype=jnp.float32) * 0.1
    A = jax.random.normal(k_r, (dim_obs, dim_obs), dtype=jnp.float32) * 0.1
    R = A @ A.T + 1e-2 * jnp.eye(dim_obs, dtype=jnp.float32)  # constant PSD noise

    # Pure-JAX reference mirroring the PyTorch semantics.
    obs_ref_val = jnp.einsum("od,ndk->nok", H, state)
    jac_ref_val = jnp.broadcast_to(H[None], (N, dim_obs, dim_state))
    r_ref_val = jnp.broadcast_to(R[None], (N, dim_obs, dim_obs))

    # 1) auto tile (>=2 blocks so both v7x TCs get work)
    # 2) forced odd-block + ragged-tail path (tile_n=24 -> 3 blocks, last=16)
    for kwargs in ({}, {"tile_n": 24}):
        obs_prior, jac, r_exp = ekf_measurement_forward(state, H, R, **kwargs)
        jax.block_until_ready((obs_prior, jac, r_exp))
        assert obs_prior.shape == (N, dim_obs, 1)
        assert jac.shape == (N, dim_obs, dim_state)
        assert r_exp.shape == (N, dim_obs, dim_obs)
        assert jnp.allclose(obs_prior, obs_ref_val, atol=1e-5)
        assert jnp.allclose(jac, jac_ref_val)
        assert jnp.allclose(r_exp, r_ref_val)

    # 3) fusion-friendly path: jac / R_expanded left as broadcasts for XLA.
    obs_prior, jac, r_exp = ekf_measurement_forward(
        state, H, R, materialize_constant_outputs=False)
    jax.block_until_ready((obs_prior, jac, r_exp))
    assert jnp.allclose(obs_prior, obs_ref_val, atol=1e-5)
    assert jnp.allclose(jac, jac_ref_val)
    assert jnp.allclose(r_exp, r_ref_val)

    # TODO(synk): non-constant-noise path (R[..., T] indexed by the module's
    # internal step counter) is stateful in the PyTorch module and not
    # implemented here.
    print("KERNEL_OK")
</pallas_src>

<mosaic_0001>
module attributes {stable_mosaic.version = 11 : i64} {
  func.func @_ekf_measurement_kernel(%arg0: i32, %arg1: i32, %arg2: memref<32x32xf32, #tpu.memory_space<vmem>>, %arg3: memref<32x16xf32, #tpu.memory_space<vmem>>, %arg4: memref<1x512xf32, #tpu.memory_space<vmem>>, %arg5: memref<1x256xf32, #tpu.memory_space<vmem>>, %arg6: memref<32x16xf32, #tpu.memory_space<vmem>>, %arg7: memref<64x512xf32, #tpu.memory_space<any>>, %arg8: memref<64x256xf32, #tpu.memory_space<any>>, %arg9: memref<32x512xf32, #tpu.memory_space<vmem>>, %arg10: memref<32x256xf32, #tpu.memory_space<vmem>>, %arg11: memref<2x!tpu.dma_semaphore, #tpu.memory_space<semaphore_mem>>) attributes {dimension_semantics = [#tpu.dimension_semantics<parallel>, #tpu.dimension_semantics<arbitrary>], iteration_bounds = array<i64: 2, 1>, scalar_prefetch = 0 : i64, scratch_operands = 3 : i64, tpu.core_type = #tpu.core_type<tc>, window_params = [{transform_indices = @transform_0, window_bounds = array<i64: 32, 32>}, {pipeline_mode = #tpu.pipeline_mode<synchronous>, transform_indices = @transform_1, window_bounds = array<i64: 32, 16>}, {pipeline_mode = #tpu.pipeline_mode<synchronous>, transform_indices = @transform_2, window_bounds = array<i64: 1, 512>}, {pipeline_mode = #tpu.pipeline_mode<synchronous>, transform_indices = @transform_3, window_bounds = array<i64: 1, 256>}, {transform_indices = @transform_4, window_bounds = array<i64: 32, 16>}, {}, {}]} {
    %c1_i32 = arith.constant 1 : i32
    %0 = arith.muli %arg0, %c1_i32 : i32
    %1 = arith.addi %0, %arg1 : i32
    %c0_i32 = arith.constant 0 : i32
    %2 = arith.cmpi eq, %arg1, %c0_i32 : i32
    %3 = arith.extui %2 : i1 to i32
    %c0_i32_0 = arith.constant 0 : i32
    %4 = arith.cmpi ne, %3, %c0_i32_0 : i32
    scf.if %4 {
      %c0_7 = arith.constant 0 : index
      %c0_8 = arith.constant 0 : index
      %12 = vector.load %arg4[%c0_7, %c0_8] : memref<1x512xf32, #tpu.memory_space<vmem>>, vector<1x512xf32>
      %13 = vector.shape_cast %12 : vector<1x512xf32> to vector<1x512xf32>
      %14 = vector.broadcast %13 : vector<1x512xf32> to vector<32x512xf32>
      %c0_9 = arith.constant 0 : index
      %c0_10 = arith.constant 0 : index
      %15 = vector.load %arg9[%c0_9, %c0_10] : memref<32x512xf32, #tpu.memory_space<vmem>>, vector<32x512xf32>
      tpu.vector_store %arg9[%c0_9, %c0_10], %14 {strides = array<i32>} : memref<32x512xf32, #tpu.memory_space<vmem>>, vector<32x512xf32>,
      %c0_11 = arith.constant 0 : index
      %c0_12 = arith.constant 0 : index
      %16 = vector.load %arg5[%c0_11, %c0_12] : memref<1x256xf32, #tpu.memory_space<vmem>>, vector<1x256xf32>
      %17 = vector.shape_cast %16 : vector<1x256xf32> to vector<1x256xf32>
      %18 = vector.broadcast %17 : vector<1x256xf32> to vector<32x256xf32>
      %c0_13 = arith.constant 0 : index
      %c0_14 = arith.constant 0 : index
      %19 = vector.load %arg10[%c0_13, %c0_14] : memref<32x256xf32, #tpu.memory_space<vmem>>, vector<32x256xf32>
      tpu.vector_store %arg10[%c0_13, %c0_14], %18 {strides = array<i32>} : memref<32x256xf32, #tpu.memory_space<vmem>>, vector<32x256xf32>,
    } else {
    }
    %c0 = arith.constant 0 : index
    %c0_1 = arith.constant 0 : index
    %5 = vector.load %arg2[%c0, %c0_1] : memref<32x32xf32, #tpu.memory_space<vmem>>, vector<32x32xf32>
    %c0_2 = arith.constant 0 : index
    %c0_3 = arith.constant 0 : index
    %6 = vector.load %arg3[%c0_2, %c0_3] : memref<32x16xf32, #tpu.memory_space<vmem>>, vector<32x16xf32>
    %cst = arith.constant dense<0.000000e+00> : vector<32x16xf32>
    %7 = tpu.matmul %5, %6, %cst {dimension_numbers = #tpu.dot_dimension_numbers<[1], [0], [0], [1], [0, 0, 1, 1], [], []>} : vector<32x32xf32>, vector<32x16xf32>, vector<32x16xf32> -> vector<32x16xf32>
    %c0_4 = arith.constant 0 : index
    %c0_5 = arith.constant 0 : index
    %8 = vector.load %arg6[%c0_4, %c0_5] : memref<32x16xf32, #tpu.memory_space<vmem>>, vector<32x16xf32>
    tpu.vector_store %arg6[%c0_4, %c0_5], %7 {strides = array<i32>} : memref<32x16xf32, #tpu.memory_space<vmem>>, vector<32x16xf32>,
    %c2_i32 = arith.constant 2 : i32
    %9 = arith.cmpi slt, %1, %c2_i32 : i32
    %10 = arith.extui %9 : i1 to i32
    %c0_i32_6 = arith.constant 0 : i32
    %11 = arith.cmpi ne, %10, %c0_i32_6 : i32
    scf.if %11 {
      %c32_i32 = arith.constant 32 : i32
      %12 = arith.muli %1, %c32_i32 : i32
      %13 = tpu.assume_multiple %12, 32 : i32
      %c0_i32_7 = arith.constant 0 : i32
      %c0_i32_8 = arith.constant 0 : i32
      %c0_i32_9 = arith.constant 0 : i32
      %14 = tpu.memref_slice %arg9[%c0_i32_8, %c0_i32_9] : memref<32x512xf32, #tpu.memory_space<vmem>> -> memref<32x512xf32, #tpu.memory_space<vmem>>
      %c0_i32_10 = arith.constant 0 : i32
      %15 = tpu.memref_slice %arg7[%13, %c0_i32_10] : memref<64x512xf32, #tpu.memory_space<any>> -> memref<32x512xf32, #tpu.memory_space<any>>
      %16 = tpu.memref_slice %arg11[%c0_i32_7] : memref<2x!tpu.dma_semaphore, #tpu.memory_space<semaphore_mem>> -> memref<1x!tpu.dma_semaphore, #tpu.memory_space<semaphore_mem>>
      %17 = tpu.memref_squeeze %16 : memref<1x!tpu.dma_semaphore, #tpu.memory_space<semaphore_mem>> -> memref<!tpu.dma_semaphore, #tpu.memory_space<semaphore_mem>>
      tpu.enqueue_dma source(%14 : memref<32x512xf32, #tpu.memory_space<vmem>>) target(%15 : memref<32x512xf32, #tpu.memory_space<any>>) target_semaphore(%17 : memref<!tpu.dma_semaphore, #tpu.memory_space<semaphore_mem>>)
      %c1_i32_11 = arith.constant 1 : i32
      %c0_i32_12 = arith.constant 0 : i32
      %c0_i32_13 = arith.constant 0 : i32
      %18 = tpu.memref_slice %arg10[%c0_i32_12, %c0_i32_13] : memref<32x256xf32, #tpu.memory_space<vmem>> -> memref<32x256xf32, #tpu.memory_space<vmem>>
      %c0_i32_14 = arith.constant 0 : i32
      %19 = tpu.memref_slice %arg8[%13, %c0_i32_14] : memref<64x256xf32, #tpu.memory_space<any>> -> memref<32x256xf32, #tpu.memory_space<any>>
      %20 = tpu.memref_slice %arg11[%c1_i32_11] : memref<2x!tpu.dma_semaphore, #tpu.memory_space<semaphore_mem>> -> memref<1x!tpu.dma_semaphore, #tpu.memory_space<semaphore_mem>>
      %21 = tpu.memref_squeeze %20 : memref<1x!tpu.dma_semaphore, #tpu.memory_space<semaphore_mem>> -> memref<!tpu.dma_semaphore, #tpu.memory_space<semaphore_mem>>
      tpu.enqueue_dma source(%18 : memref<32x256xf32, #tpu.memory_space<vmem>>) target(%19 : memref<32x256xf32, #tpu.memory_space<any>>) target_semaphore(%21 : memref<!tpu.dma_semaphore, #tpu.memory_space<semaphore_mem>>)
      %c0_i32_15 = arith.constant 0 : i32
      %c0_i32_16 = arith.constant 0 : i32
      %c0_i32_17 = arith.constant 0 : i32
      %22 = tpu.memref_slice %arg9[%c0_i32_16, %c0_i32_17] : memref<32x512xf32, #tpu.memory_space<vmem>> -> memref<32x512xf32, #tpu.memory_space<vmem>>
      %c0_i32_18 = arith.constant 0 : i32
      %23 = tpu.memref_slice %arg7[%13, %c0_i32_18] : memref<64x512xf32, #tpu.memory_space<any>> -> memref<32x512xf32, #tpu.memory_space<any>>
      %24 = tpu.memref_slice %arg11[%c0_i32_15] : memref<2x!tpu.dma_semaphore, #tpu.memory_space<semaphore_mem>> -> memref<1x!tpu.dma_semaphore, #tpu.memory_space<semaphore_mem>>
      %25 = tpu.memref_squeeze %24 : memref<1x!tpu.dma_semaphore, #tpu.memory_space<semaphore_mem>> -> memref<!tpu.dma_semaphore, #tpu.memory_space<semaphore_mem>>
      tpu.wait_dma2 semaphore(%25 : memref<!tpu.dma_semaphore, #tpu.memory_space<semaphore_mem>>) src(%22 : memref<32x512xf32, #tpu.memory_space<vmem>>) dst(%23 : memref<32x512xf32, #tpu.memory_space<any>>)
      %c1_i32_19 = arith.constant 1 : i32
      %c0_i32_20 = arith.constant 0 : i32
      %c0_i32_21 = arith.constant 0 : i32
      %26 = tpu.memref_slice %arg10[%c0_i32_20, %c0_i32_21] : memref<32x256xf32, #tpu.memory_space<vmem>> -> memref<32x256xf32, #tpu.memory_space<vmem>>
      %c0_i32_22 = arith.constant 0 : i32
      %27 = tpu.memref_slice %arg8[%13, %c0_i32_22] : memref<64x256xf32, #tpu.memory_space<any>> -> memref<32x256xf32, #tpu.memory_space<any>>
      %28 = tpu.memref_slice %arg11[%c1_i32_19] : memref<2x!tpu.dma_semaphore, #tpu.memory_space<semaphore_mem>> -> memref<1x!tpu.dma_semaphore, #tpu.memory_space<semaphore_mem>>
      %29 = tpu.memref_squeeze %28 : memref<1x!tpu.dma_semaphore, #tpu.memory_space<semaphore_mem>> -> memref<!tpu.dma_semaphore, #tpu.memory_space<semaphore_mem>>
      tpu.wait_dma2 semaphore(%29 : memref<!tpu.dma_semaphore, #tpu.memory_space<semaphore_mem>>) src(%26 : memref<32x256xf32, #tpu.memory_space<vmem>>) dst(%27 : memref<32x256xf32, #tpu.memory_space<any>>)
    } else {
    }
    return
  }
  func.func @transform_0(%arg0: i32, %arg1: i32) -> (i32, i32) {
    %c1_i32 = arith.constant 1 : i32
    %0 = arith.muli %arg0, %c1_i32 : i32
    %1 = arith.addi %0, %arg1 : i32
    %c1_i32_0 = arith.constant 1 : i32
    %2 = arith.minsi %1, %c1_i32_0 : i32
    %c0_i32 = arith.constant 0 : i32
    %c0_i32_1 = arith.constant 0 : i32
    return %2, %c0_i32 : i32, i32
  }
  func.func @transform_1(%arg0: i32, %arg1: i32) -> (i32, i32) {
    %c0_i32 = arith.constant 0 : i32
    %c0_i32_0 = arith.constant 0 : i32
    %c0_i32_1 = arith.constant 0 : i32
    return %c0_i32, %c0_i32_0 : i32, i32
  }
  func.func @transform_2(%arg0: i32, %arg1: i32) -> (i32, i32) {
    %c0_i32 = arith.constant 0 : i32
    %c0_i32_0 = arith.constant 0 : i32
    %c0_i32_1 = arith.constant 0 : i32
    return %c0_i32, %c0_i32_0 : i32, i32
  }
  func.func @transform_3(%arg0: i32, %arg1: i32) -> (i32, i32) {
    %c0_i32 = arith.constant 0 : i32
    %c0_i32_0 = arith.constant 0 : i32
    %c0_i32_1 = arith.constant 0 : i32
    return %c0_i32, %c0_i32_0 : i32, i32
  }
  func.func @transform_4(%arg0: i32, %arg1: i32) -> (i32, i32) {
    %c1_i32 = arith.constant 1 : i32
    %0 = arith.muli %arg0, %c1_i32 : i32
    %1 = arith.addi %0, %arg1 : i32
    %c1_i32_0 = arith.constant 1 : i32
    %2 = arith.minsi %1, %c1_i32_0 : i32
    %c0_i32 = arith.constant 0 : i32
    %c0_i32_1 = arith.constant 0 : i32
    return %2, %c0_i32 : i32, i32
  }
}

</mosaic_0001>

<bundles_post_ra>
// kernel: tpu_custom_call.1
= control target key start
LH: loop header
LB: loop body
LE: loop exit
PB: predicated region body
PF: predicated region fallthrough
CT: control target
= control target key end

     0   :  { %s684_s21 = smov 0   ;;  %s686_s22 = smov 0   ;;  %s782_s0 = inlined_call_operand.vmem [shape: f32[64,32], index: 0, kind: input, shape index: {}]   ;;  %s783_s1 = inlined_call_operand.vmem [shape: f32[32,16], index: 1, kind: input, shape index: {}]   ;;  %s784_s2 = inlined_call_operand.vmem [shape: f32[1,512], index: 2, kind: input, shape index: {}]   ;;  %s785_s3 = inlined_call_operand.vmem [shape: f32[1,256], index: 3, kind: input, shape index: {}]   ;;  %s786_s4 = inlined_call_operand.vmem [shape: f32[64,16], index: 4, kind: output, shape index: {0}]   ;;  %s787_s5 = inlined_call_operand.hbm [shape: f32[64,512], index: 5, kind: output, shape index: {1}]   ;;  %s788_s6 = inlined_call_operand.hbm [shape: f32[64,256], index: 6, kind: output, shape index: {2}]  }
   0x1   :  { %s688_s23 = smov 0  }
   0x2 LB: > { %s29_s24 = sadd.s32 1, %s641_s22  ;;  %p494_p0 = scmp.ge.s32.totalorder %s645_s23, 1  ;;  %s645_s23 = sphi %s688_s23, %s17_s23   ;;  %s641_s22 = sphi %s686_s22, %s790_s22   ;;  %s637_s21 = sphi %s684_s21, %s789_s21  }
   0x3   : > { %p31_p1 = scmp.ge.s32.totalorder %s29_s24, 2  ;;  %p196_p2 = scmp.lt.s32.totalorder %s645_s23, 3 }
   0x5   : > { %s792_s24 = smov (%p31_p1, %s29_s24), 0  ;;  %p197_p3 = pnand %p494_p0, %p196_p2 }
   0x6   : > { %p229_p4 = scmp.lt.s32.totalorder (!%p197_p3), %s637_s21, 1  ;;  %s504_s17 = sshll.u32 (!%p197_p3), %s637_s21, 5 }
   0x7   : > { %200 = sbr.rel (%p197_p3) target bundleno = 159 (0x9f), region = 36  ;;  %s357_s18 = sshra.s32 (!%p197_p3), %s504_s17, 3 }
   0x8   : > { %s513_s19 = sshll.u32 (!%p197_p3), %s357_s18, 5  ;;  %s647_s29 = smov (!%p197_p3), [#allocation2]  }
   0x9   : > { %s361_s26 = scalar_lea.hbm (!%p197_p3), %s787_s5, %s513_s19  ;;  %s369_s30 = sshll.u32 (!%p197_p3), %s647_s29, 4  ;;  %s370_s30 = int_to_ptr.vmem [resolvable:$true] %s369_s30 }
   0xa   : > { %p532_p6 = scmp.lt.s32.totalorder (!%p197_p3), %s637_s21, 2  ;;  %s514_s8 = sshll.u32 (!%p197_p3), %s357_s18, 4 }
   0xb   : > { %s377_s13 = scalar_lea.hbm (!%p197_p3), %s788_s6, %s514_s8  ;;  %s579_s18 = scalar_lea.hbm (!%p197_p3), %s787_s5, 256 }
   0xc   : > { %v304_v0 = vld [vmem:[%s783_s1 + $0x18] sm:$0xff]  ;;  %v303_v1 = vld [vmem:[%s783_s1 + $0x10] sm:$0xff]  ;;  %v302_v2 = vld [vmem:[%s783_s1 + $0x8] sm:$0xff]  ;;  %s230_s7 = scalar_select %p229_p4, %s637_s21, 1  ;;  %vm305_vm0 = vcmask 261120  }
   0xd   : > { %516 = vmatpush.msra.mxu2 %v304_v0  ;;  %517 = vmatpush.msra.mxu3 %v304_v0  ;;  %v301_v3 = vld [vmem:[%s783_s1] sm:$0xff] }
   0xe   : > { %330 = vmatpush.msra.mxu0 %v304_v0  ;;  %515 = vmatpush.msra.mxu1 %v304_v0  ;;  %s495_s10 = sshll.u32 %s230_s7, 2  ;;  %v257_v8 = vld [vmem:[%s784_s2] sm:$0xf]  ;;  %s371_s7 = sshll.u32 %s361_s26, 4  ;;  %s372_s7 = int_to_ptr.hbm [resolvable:$true] %s371_s7 }
   0xf   : > { %519 = vmatpush.msra.mxu2 %v303_v1  ;;  %520 = vmatpush.msra.mxu3 %v303_v1  ;;  %p232_p5 = scmp.lt.s32.totalorder %s495_s10, 7  ;;  %v259_v9 = vperm.slane %v257_v8, 0  ;;  %v260_v10 = vperm.slane %v257_v8, 1  ;;  %v261_v11 = vperm.slane %v257_v8, 2  ;;  %v262_v12 = vperm.slane %v257_v8, 3 }
  0x10   : > { %331 = vmatpush.msra.mxu0 %v303_v1  ;;  %518 = vmatpush.msra.mxu1 %v303_v1  ;;  %v283_v13 = vld [vmem:[%s785_s3] sm:$0x3] }
  0x11   : > { %522 = vmatpush.msra.mxu2 %v302_v2  ;;  %523 = vmatpush.msra.mxu3 %v302_v2  ;;  %s794_s10 = smov (!%p232_p5, %s495_s10), 7  ;;  %267 = vst [vmem:[#allocation2] sm:$0xff] %v259_v9  ;;  %v285_v14 = vperm.slane %v283_v13, 0  ;;  %v286_v15 = vperm.slane %v283_v13, 1 }
  0x12   : > { %332 = vmatpush.msra.mxu0 %v302_v2  ;;  %521 = vmatpush.msra.mxu1 %v302_v2  ;;  %s496_s11 = sshll.u32 %s794_s10, 3  ;;  %268 = vst [vmem:[#allocation2 + $0x8] sm:$0xff] %v260_v10 }
  0x13   : > { %525 = vmatpush.msra.mxu2 %v301_v3  ;;  %526 = vmatpush.msra.mxu3 %v301_v3  ;;  %s235_s14 = scalar_lea.vmem %s782_s0, %s496_s11  ;;  %269 = vst [vmem:[#allocation2 + $0x10] sm:$0xff] %v261_v11 }
  0x14   : > { %333 = vmatpush.msra.mxu0 %v301_v3  ;;  %524 = vmatpush.msra.mxu1 %v301_v3  ;;  %v299_v4 = vld [vmem:[%s235_s14 + $0x10] sm:$0xff]  ;;  %v300_v5 = vld [vmem:[%s235_s14 + $0x18] sm:$0xff]  ;;  %v297_v6 = vld [vmem:[%s235_s14] sm:$0xff]  ;;  %270 = vst [vmem:[#allocation2 + $0x18] sm:$0xff] %v262_v12 }
  0x15   : > { %501 = vmatmul.msk.f32.vlgmr.msra.gmra.mxu2 %vm305_vm0, %v299_v4  ;;  %502 = vmatmul.msk.f32.vlgmr.msra.gmra.mxu3 %vm305_vm0, %v300_v5  ;;  %v298_v7 = vld [vmem:[%s235_s14 + $0x8] sm:$0xff]  ;;  %271 = vst [vmem:[#allocation2 + $0x20] sm:$0xff] %v259_v9  ;;  %s573_s14 = sshra.s32 %s372_s7, 4  ;;  %s574_s14 = int_to_ptr.hbm [resolvable:$true] %s573_s14 }
  0x16   : > { %499 = vmatmul.msk.f32.vlgmr.msra.gmra.mxu0 %vm305_vm0, %v297_v6  ;;  %500 = vmatmul.msk.f32.vlgmr.msra.gmra.mxu1 %vm305_vm0, %v298_v7  ;;  %272 = vst [vmem:[#allocation2 + $0x28] sm:$0xff] %v260_v10  ;;  %s575_s15 = scalar_lea.hbm %s574_s14, 128  ;;  %p580_p10 = scmp.lt.s32.totalorder %s574_s14, %s787_s5 }
  0x17   : > { %273 = vst [vmem:[#allocation2 + $0x30] sm:$0xff] %v261_v11  ;;  %p576_p7 = scmp.ne.s32.totalorder %s574_s14, %s575_s15  ;;  %p581_p11 = scmp.lt.s32.totalorder %s579_s18, %s575_s15 }
  0x18   : > { %274 = vst [vmem:[#allocation2 + $0x38] sm:$0xff] %v262_v12 }
  0x19   : > { %275 = vst [vmem:[#allocation2 + $0x40] sm:$0xff] %v259_v9  ;;  %p577_p8 = pnand %p576_p7, %p532_p6  ;;  %p582_p12 = por %p581_p11, %p580_p10 }
  0x1a   : > { %276 = vst [vmem:[#allocation2 + $0x48] sm:$0xff] %v260_v10 }
  0x1b   : > { %277 = vst [vmem:[#allocation2 + $0x50] sm:$0xff] %v261_v11  ;;  %p578_p9 = pneg %p577_p8 }
  0x1c   : > { %278 = vst [vmem:[#allocation2 + $0x58] sm:$0xff] %v262_v12 }
  0x1d   : > { %279 = vst [vmem:[#allocation2 + $0x60] sm:$0xff] %v259_v9  ;;  %p583_p13 = pnand %p582_p12, %p578_p9 }
  0x1e   : > { %280 = vst [vmem:[#allocation2 + $0x68] sm:$0xff] %v260_v10 }
  0x1f   : > { %281 = vst [vmem:[#allocation2 + $0x70] sm:$0xff] %v261_v11 }
  0x20   : > { %282 = vst [vmem:[#allocation2 + $0x78] sm:$0xff] %v262_v12 }
  0x21   : > { %586 = shalt.err (!%p583_p13)  }
  0x22   : > { %528 = dma.vmem_to_hbm [thread:$0]  (%p532_p6), %s370_s30, 2048, %s372_s7, [#allocation4]  ;;  %289 = vst [vmem:[#allocation3] sm:$0xff] %v285_v14 }
  0x23   : > { %290 = vst [vmem:[#allocation3 + $0x8] sm:$0xff] %v286_v15  ;;  %s648_s25 = smov [#allocation3]   ;;  %s388_s27 = sshll.u32 %s377_s13, 4  ;;  %s389_s27 = int_to_ptr.hbm [resolvable:$true] %s388_s27 }
  0x24   : > { %291 = vst [vmem:[#allocation3 + $0x10] sm:$0xff] %v285_v14  ;;  %s386_s26 = sshll.u32 %s648_s25, 4  ;;  %s601_s28 = sshra.s32 %s389_s27, 4  ;;  %s387_s26 = int_to_ptr.vmem [resolvable:$true] %s386_s26  ;;  %s602_s28 = int_to_ptr.hbm [resolvable:$true] %s601_s28 }
  0x25   : > { %292 = vst [vmem:[#allocation3 + $0x18] sm:$0xff] %v286_v15  ;;  %s603_s29 = scalar_lea.hbm %s602_s28, 64  ;;  %s607_s8 = scalar_lea.hbm %s788_s6, 128 }
  0x26   : > { %293 = vst [vmem:[#allocation3 + $0x20] sm:$0xff] %v285_v14  ;;  %p604_p0 = scmp.ne.s32.totalorder %s602_s28, %s603_s29  ;;  %p608_p3 = scmp.lt.s32.totalorder %s602_s28, %s788_s6 }
  0x27   : > { %294 = vst [vmem:[#allocation3 + $0x28] sm:$0xff] %v286_v15  ;;  %p609_p4 = scmp.lt.s32.totalorder %s607_s8, %s603_s29 }
  0x28   : > { %295 = vst [vmem:[#allocation3 + $0x30] sm:$0xff] %v285_v14  ;;  %p605_p1 = pnand %p604_p0, %p532_p6 }
  0x29   : > { %296 = vst [vmem:[#allocation3 + $0x38] sm:$0xff] %v286_v15  ;;  %p610_p5 = por %p609_p4, %p608_p3 }
  0x2a   : > { %p606_p2 = pneg %p605_p1 }
  0x2c   : > { %p611_p7 = pnand %p610_p5, %p606_p2 }
  0x2e   : > { %614 = shalt.err (!%p611_p7)  }
  0x2f   : > { %529 = dma.vmem_to_hbm [thread:$0]  (%p532_p6), %s387_s26, 1024, %s389_s27, [#allocation4 + $0x1]  ;;  %vm347_vm1 = vcmask 130048  }
  0x30   : > { %s247_s15 = scalar_lea.vmem %s786_s4, %s496_s11 }
  0x93   : > { %v335_v16 = vpop.f32.mrf.mxu0  ;;  %v338_v17 = vpop.f32.mrf.mxu1 }
  0x94   : > { %348 = vst.msk [vmem:[%s247_s15] sm:$0xff] %vm347_vm1, %v335_v16 }
  0x95   : > { %349 = vst.msk [vmem:[%s247_s15 + $0x8] sm:$0xff] %vm347_vm1, %v338_v17 }
  0x98   : > { %v341_v18 = vpop.f32.mrf.mxu2  ;;  %v344_v19 = vpop.f32.mrf.mxu3 }
  0x99   : > { %350 = vst.msk [vmem:[%s247_s15 + $0x10] sm:$0xff] %vm347_vm1, %v341_v18 }
  0x9a   : > { %351 = vst.msk [vmem:[%s247_s15 + $0x18] sm:$0xff] %vm347_vm1, %v344_v19 }
  0x9b   : > { %628 = dma.done.wait (%p532_p6), [#allocation4], 2048 }
  0x9c   : > { %630 = vsyncadd (%p532_p6), [#allocation4], 4294965248 }
  0x9d   : > { %632 = dma.done.wait (%p532_p6), [#allocation4 + $0x1], 1024 }
  0x9e   : > { %634 = vsyncadd (%p532_p6), [#allocation4 + $0x1], 4294966272 }
  0x9f PF: > { %s17_s23 = sadd.s32 1, %s645_s23   ;;  %s789_s21 = smov %s641_s22 }
  0xa0   : > { %p14_p8 = scmp.ge.s32.totalorder %s17_s23, 4   ;;  %s790_s22 = smov %s792_s24 }
  0xa2   :  { %16 = sbr.rel (!%p14_p8) target bundleno = 2 (0x2), region = 86 }
  0xa7   :  { %430 = vsyncmov [#allocation4] }
  0xaa   :  { %s431_s10 = vpop.sfrf %430 }
  0xab   :  { %p511_p9 = scmp.ne.s32.totalorder %s431_s10, 0 }
  0xad   :  { %435 = shalt.err (%p511_p9)  }
  0xae   :  { %437 = vsyncmov [#allocation4 + $0x1] }
  0xb1   :  { %s438_s11 = vpop.sfrf %437 }
  0xb2   :  { %p512_p6 = scmp.ne.s32.totalorder %s438_s11, 0 }
  0xb4   :  { %442 = shalt.err (%p512_p6)  }

</bundles_post_ra>
